<compile_context>
chip_gen: v7x
topology: tpu7x:2x2x1
jax: 0.10.0
libtpu: 0.0.40
codegen_flags: <defaults>
</compile_context>

<pallas_src>
import jax
import jax.numpy as jnp
from jax.experimental import pallas as pl
from jax.experimental.pallas import tpu as pltpu


LANE = 512              # lane-dense last dim (multiple of 128 -> unmasked vst)
MAX_BLOCK_ROWS = 2048   # 2048 x 512 f32 = 4 MiB per array per buffer


def _cdiv(a, b):
    return (a + b - 1) // b


def _round_up(a, b):
    return _cdiv(a, b) * b


def _sublane(dtype):
    # Minimum second-to-last tile dim per dtype: f32 -> 8, bf16 -> 16, int8 -> 32.
    return {4: 8, 2: 16, 1: 32}.get(jnp.dtype(dtype).itemsize, 8)


def _uniform_from_bits(shape):
    """Uniform [0, 1) float32 from the hardware PRNG — pure VPU bit ops."""
    bits = pltpu.prng_random_bits(shape)
    if bits.dtype != jnp.uint32:
        bits = pltpu.bitcast(bits, jnp.uint32)
    # Mantissa trick: exponent bits for [1, 2), 23 random mantissa bits, minus 1.
    fbits = pltpu.bitcast((bits >> 9) | jnp.uint32(0x3F800000), jnp.float32)
    return fbits - 1.0


def _gumbel_sigmoid_prng_kernel(seed_ref, x_ref, o_ref):
    # Per-block seed keeps results deterministic under "parallel" grid sharding.
    pltpu.prng_seed(seed_ref[0] + pl.program_id(0))
    x = x_ref[...].astype(jnp.float32)
    u = _uniform_from_bits(x.shape)
    # gumbel_noise = -log(-log(u + 1e-10) + 1e-10); epsilon keeps log(0) away.
    gumbel = -jnp.log(-jnp.log(u + 1e-10) + 1e-10)
    # Straight-through forward value is exactly y_hard, and for temperature > 0
    # sigmoid((x+g)/t) > 0.5  <=>  x + g > 0, so no divide / sigmoid / exp.
    o_ref[...] = ((x + gumbel) > 0.0).astype(o_ref.dtype)


def _gumbel_sigmoid_noise_kernel(x_ref, u_ref, o_ref):
    # Fallback (noise streamed from HBM) for non-TPU / interpret backends.
    x = x_ref[...].astype(jnp.float32)
    gumbel = -jnp.log(-jnp.log(u_ref[...] + 1e-10) + 1e-10)
    o_ref[...] = ((x + gumbel) > 0.0).astype(o_ref.dtype)


def gumbel_sigmoid(logits, *, temperature=1.0, key=None, use_inkernel_prng=None):
    """Pallas TPU implementation of GumbelSigmoid.forward (forward value only).

    Returns a 0/1-valued array (same forward value as the PyTorch
    straight-through output y = y_hard - y_soft.detach() + y_soft).
    """
    if temperature <= 0.0:
        raise ValueError("GumbelSigmoid kernel assumes temperature > 0")
    if key is None:
        key = jax.random.PRNGKey(0)
    if use_inkernel_prng is None:
        use_inkernel_prng = jax.devices()[0].platform == "tpu"

    orig_shape = logits.shape
    # torch promotion: y_hard is .float(), so the result is at least float32.
    out_dtype = jnp.promote_types(logits.dtype, jnp.float32)

    n = logits.size
    rows = _cdiv(n, LANE)
    pad = rows * LANE - n          # < LANE elems; 0 for the common NCHW case

    x_flat = logits.reshape(-1)
    if pad:
        x_flat = jnp.pad(x_flat, (0, pad))
    x2d = x_flat.reshape(rows, LANE)

    sub = _sublane(logits.dtype)
    if rows <= sub:
        block_rows = rows          # full-extent single block (tiny input)
    elif rows <= MAX_BLOCK_ROWS:
        # ~8 grid steps so the parallel axis shards across both v7x TensorCores.
        block_rows = max(sub, _round_up(_cdiv(rows, 8), sub))
    else:
        block_rows = MAX_BLOCK_ROWS
    grid = (_cdiv(rows, block_rows),)   # last block may be partial; Pallas masks it

    out_shape = jax.ShapeDtypeStruct((rows, LANE), out_dtype)
    bytes_in = rows * LANE * jnp.dtype(logits.dtype).itemsize
    bytes_out = rows * LANE * jnp.dtype(out_dtype).itemsize
    compiler_params = pltpu.CompilerParams(
        dimension_semantics=("parallel",),      # megacore sharding on v7x
        vmem_limit_bytes=32 * 1024 * 1024,      # headroom on v5e/v6e/v7x
    )

    if use_inkernel_prng:
        seed = jax.random.randint(
            key, (1,), 0, jnp.iinfo(jnp.int32).max, dtype=jnp.int32)
        out2d = pl.pallas_call(
            _gumbel_sigmoid_prng_kernel,
            out_shape=out_shape,
            grid_spec=pltpu.PrefetchScalarGridSpec(
                num_scalar_prefetch=1,
                grid=grid,
                in_specs=[pl.BlockSpec((block_rows, LANE), lambda i, seed: (i, 0))],
                out_specs=pl.BlockSpec((block_rows, LANE), lambda i, seed: (i, 0)),
            ),
            compiler_params=compiler_params,
            cost_estimate=pl.CostEstimate(
                flops=8 * n, transcendentals=2 * n,
                bytes_accessed=bytes_in + bytes_out),
        )(seed, x2d)
    else:
        u2d = jax.random.uniform(key, (rows, LANE), dtype=jnp.float32)
        out2d = pl.pallas_call(
            _gumbel_sigmoid_noise_kernel,
            out_shape=out_shape,
            grid=grid,
            in_specs=[pl.BlockSpec((block_rows, LANE), lambda i: (i, 0)),
                      pl.BlockSpec((block_rows, LANE), lambda i: (i, 0))],
            out_specs=pl.BlockSpec((block_rows, LANE), lambda i: (i, 0)),
            compiler_params=compiler_params,
            cost_estimate=pl.CostEstimate(
                flops=6 * n, transcendentals=2 * n,
                bytes_accessed=bytes_in + bytes_out + rows * LANE * 4),
        )(x2d, u2d)

    if pad:
        return out2d.reshape(-1)[:n].reshape(orig_shape)
    return out2d.reshape(orig_shape)


if __name__ == "__main__":
    key = jax.random.PRNGKey(0)
    k_logits, k_noise = jax.random.split(key)

    # Small NCHW input: (B=2, C=4, H=16, W=16) -> 2048 elems, LANE-divisible.
    logits = jax.random.normal(k_logits, (2, 4, 16, 16), dtype=jnp.float32)

    y = gumbel_sigmoid(logits, temperature=1.0, key=k_noise)
    y = jax.block_until_ready(y)

    # Sanity: output must be exactly 0/1 valued with the input's shape/dtype,
    # and not degenerate (all zeros / all ones would indicate a broken PRNG).
    assert y.shape == logits.shape
    assert y.dtype == jnp.float32
    assert bool(jnp.all((y == 0.0) | (y == 1.0)))
    m = float(jnp.mean(y))
    assert 0.1 < m < 0.99, f"degenerate output mean {m}"

    print("KERNEL_OK")
</pallas_src>

<mosaic_0001>
module attributes {stable_mosaic.version = 11 : i64} {
  func.func @_gumbel_sigmoid_noise_kernel(%arg0: i32, %arg1: memref<4x512xf32, #tpu.memory_space<vmem>>, %arg2: memref<4x512xf32, #tpu.memory_space<vmem>>, %arg3: memref<4x512xf32, #tpu.memory_space<vmem>>) attributes {dimension_semantics = [#tpu.dimension_semantics<parallel>], iteration_bounds = array<i64: 1>, scalar_prefetch = 0 : i64, scratch_operands = 0 : i64, tpu.core_type = #tpu.core_type<tc>, window_params = [{transform_indices = @transform_0, window_bounds = array<i64: 4, 512>}, {transform_indices = @transform_1, window_bounds = array<i64: 4, 512>}, {transform_indices = @transform_2, window_bounds = array<i64: 4, 512>}]} {
    %c0 = arith.constant 0 : index
    %c0_0 = arith.constant 0 : index
    %0 = vector.load %arg1[%c0, %c0_0] : memref<4x512xf32, #tpu.memory_space<vmem>>, vector<4x512xf32>
    %c0_1 = arith.constant 0 : index
    %c0_2 = arith.constant 0 : index
    %1 = vector.load %arg2[%c0_1, %c0_2] : memref<4x512xf32, #tpu.memory_space<vmem>>, vector<4x512xf32>
    %cst = arith.constant 1.000000e-10 : f32
    %2 = vector.broadcast %cst : f32 to vector<4x512xf32>
    %3 = arith.addf %1, %2 : vector<4x512xf32>
    %4 = math.log %3 : vector<4x512xf32>
    %cst_3 = arith.constant 0.000000e+00 : f32
    %5 = vector.broadcast %cst_3 : f32 to vector<4x512xf32>
    %6 = arith.subf %5, %4 : vector<4x512xf32>
    %cst_4 = arith.constant 1.000000e-10 : f32
    %7 = vector.broadcast %cst_4 : f32 to vector<4x512xf32>
    %8 = arith.addf %6, %7 : vector<4x512xf32>
    %9 = math.log %8 : vector<4x512xf32>
    %cst_5 = arith.constant 0.000000e+00 : f32
    %10 = vector.broadcast %cst_5 : f32 to vector<4x512xf32>
    %11 = arith.subf %10, %9 : vector<4x512xf32>
    %12 = arith.addf %0, %11 : vector<4x512xf32>
    %cst_6 = arith.constant 0.000000e+00 : f32
    %13 = vector.broadcast %cst_6 : f32 to vector<4x512xf32>
    %14 = arith.cmpf ogt, %12, %13 : vector<4x512xf32>
    %15 = arith.extui %14 : vector<4x512xi1> to vector<4x512xi32>
    %16 = arith.sitofp %15 : vector<4x512xi32> to vector<4x512xf32>
    %c0_7 = arith.constant 0 : index
    %c0_8 = arith.constant 0 : index
    %17 = vector.load %arg3[%c0_7, %c0_8] : memref<4x512xf32, #tpu.memory_space<vmem>>, vector<4x512xf32>
    tpu.vector_store %arg3[%c0_7, %c0_8], %16 {strides = array<i32>} : memref<4x512xf32, #tpu.memory_space<vmem>>, vector<4x512xf32>,
    return
  }
  func.func @transform_0(%arg0: i32) -> (i32, i32) {
    %c0_i32 = arith.constant 0 : i32
    %c0_i32_0 = arith.constant 0 : i32
    return %arg0, %c0_i32 : i32, i32
  }
  func.func @transform_1(%arg0: i32) -> (i32, i32) {
    %c0_i32 = arith.constant 0 : i32
    %c0_i32_0 = arith.constant 0 : i32
    return %arg0, %c0_i32 : i32, i32
  }
  func.func @transform_2(%arg0: i32) -> (i32, i32) {
    %c0_i32 = arith.constant 0 : i32
    %c0_i32_0 = arith.constant 0 : i32
    return %arg0, %c0_i32 : i32, i32
  }
}

</mosaic_0001>

<bundles_post_ra>
// kernel: tpu_custom_call.1
= control target key start
LH: loop header
LB: loop body
LE: loop exit
PB: predicated region body
PF: predicated region fallthrough
CT: control target
= control target key end

     0   :  { %7 = vsyncpa [#allocation3], 0  ;;  %s223_s0 = inlined_call_operand.hbm [shape: f32[4,512], index: 0, kind: input, shape index: {}]   ;;  %s224_s1 = inlined_call_operand.hbm [shape: f32[4,512], index: 1, kind: input, shape index: {}]   ;;  %s225_s2 = inlined_call_operand.hbm [shape: f32[4,512], index: 2, kind: output, shape index: {}]  }
   0x1   :  { %8 = vsyncpa [#allocation6], 0 }
   0x2   :  { %9 = vsyncpa [#allocation4], 0  ;;  %s168_s9 = smov [#allocation2]   ;;  %s169_s11 = smov [#allocation5]  }
   0x3   :  { %s16_s10 = sshll.u32 %s168_s9, 4  ;;  %s26_s12 = sshll.u32 %s169_s11, 4  ;;  %s17_s10 = int_to_ptr.vmem [resolvable:$true] %s16_s10  ;;  %s27_s12 = int_to_ptr.vmem [resolvable:$true] %s26_s12 }
   0x4   :  { %s96_s15 = scalar_lea.hbm %s223_s0, 256 }
   0x5   :  { %p97_p0 = scmp.ne.s32.totalorder %s223_s0, %s96_s15  ;;  %p100_p1 = scmp.lt.u32.totalorder %s96_s15, %s223_s0 }
   0x7   :  { %p102_p2 = pnand %p100_p1, %p97_p0 }
   0x9   :  { %105 = shalt.err (!%p102_p2)
}
   0xa   :  { %s106_s20 = scalar_lea.vmem %s17_s10, 256  ;;  %p111_p4 = scmp.lt.s32.totalorder %s17_s10, %s17_s10 }
   0xb   :  { %p107_p3 = scmp.ne.s32.totalorder %s17_s10, %s106_s20  ;;  %p112_p5 = scmp.lt.s32.totalorder %s106_s20, %s106_s20 }
   0xd   :  { %p113_p6 = por %p112_p5, %p111_p4 }
   0xf   :  { %p114_p7 = pnand %p113_p6, %p107_p3 }
  0x11   :  { %117 = shalt.err (!%p114_p7)
}
  0x12   :  { %19 = dma.hbm_to_vmem [thread:$0]  %s223_s0, 256, %s17_s10, [#allocation3]  }
  0x13   :  { %s118_s25 = scalar_lea.hbm %s224_s1, 256 }
  0x14   :  { %p119_p8 = scmp.ne.s32.totalorder %s224_s1, %s118_s25  ;;  %p122_p9 = scmp.lt.u32.totalorder %s118_s25, %s224_s1 }
  0x16   :  { %p124_p10 = pnand %p122_p9, %p119_p8 }
  0x18   :  { %127 = shalt.err (!%p124_p10)
}
  0x19   :  { %s128_s30 = scalar_lea.vmem %s27_s12, 256  ;;  %p133_p12 = scmp.lt.s32.totalorder %s27_s12, %s27_s12 }
  0x1a   :  { %p129_p11 = scmp.ne.s32.totalorder %s27_s12, %s128_s30  ;;  %p134_p13 = scmp.lt.s32.totalorder %s128_s30, %s128_s30 }
  0x1c   :  { %p135_p0 = por %p134_p13, %p133_p12 }
  0x1e   :  { %p136_p1 = pnand %p135_p0, %p129_p11 }
  0x20   :  { %139 = shalt.err (!%p136_p1)
}
  0x21   :  { %29 = dma.hbm_to_vmem [thread:$0]  %s224_s1, 256, %s27_s12, [#allocation6]  }
  0x22   :  { %162 = dma.done.wait [#allocation3], 256  }
  0x23   :  { %163 = vsyncadd [#allocation3], 4294967040 }
  0x24   :  { %164 = dma.done.wait [#allocation6], 256  }
  0x25   :  { %165 = vsyncadd [#allocation6], 4294967040  ;;  %v38_v0 = vld [vmem:[#allocation5] sm:$0xff]  ;;  %v39_v2 = vld [vmem:[#allocation5 + $0x8] sm:$0xff]  ;;  %s170_s1 = smov [#allocation7]   ;;  %v171_v22 = vmov 0.0  }
  0x26   :  { %v40_v1 = vadd.f32 1e-10, %v38_v0  ;;  %v41_v3 = vadd.f32 1e-10, %v39_v2  ;;  %v36_v15 = vld [vmem:[#allocation2] sm:$0xff]  ;;  %v37_v18 = vld [vmem:[#allocation2 + $0x8] sm:$0xff] }
  0x27   :  { %s72_s4 = sshll.u32 %s170_s1, 4  ;;  %s73_s4 = int_to_ptr.vmem [resolvable:$true] %s72_s4 }
  0x28   :  { %88 = vlog2.f32 %v40_v1  ;;  %s140_s5 = scalar_lea.vmem %s73_s4, 256  ;;  %p145_p3 = scmp.lt.s32.totalorder %s73_s4, %s73_s4 }
  0x29   :  { %90 = vlog2.f32 %v41_v3  ;;  %p141_p2 = scmp.ne.s32.totalorder %s73_s4, %s140_s5  ;;  %p146_p4 = scmp.lt.s32.totalorder %s140_s5, %s140_s5 }
  0x2b   :  { %p147_p5 = por %p146_p4, %p145_p3 }
  0x2d   :  { %p148_p6 = pnand %p147_p5, %p141_p2 }
  0x32   :  { %v89_v4 = vpop.eup %88 }
  0x33   :  { %v91_v5 = vpop.eup %90  ;;  %v43_v6 = vmul.f32 0.6931472, %v89_v4 }
  0x34   :  { %v45_v7 = vmul.f32 0.6931472, %v91_v5 }
  0x35   :  { %v46_v8 = vsub.f32 0.0, %v43_v6 }
  0x36   :  { %v47_v9 = vsub.f32 0.0, %v45_v7 }
  0x37   :  { %v48_v10 = vadd.f32 1e-10, %v46_v8 }
  0x38   :  { %v49_v11 = vadd.f32 1e-10, %v47_v9 }
  0x39   :  { %92 = vlog2.f32 %v48_v10 }
  0x3a   :  { %94 = vlog2.f32 %v49_v11 }
  0x43   :  { %v93_v12 = vpop.eup %92 }
  0x44   :  { %v95_v13 = vpop.eup %94  ;;  %v51_v14 = vmul.f32 0.6931472, %v93_v12 }
  0x45   :  { %v53_v16 = vmul.f32 0.6931472, %v95_v13 }
  0x46   :  { %v54_v17 = vsub.f32 0.0, %v51_v14 }
  0x47   :  { %v55_v19 = vsub.f32 0.0, %v53_v16 }
  0x48   :  { %v56_v20 = vadd.f32 %v54_v17, %v36_v15 }
  0x49   :  { %v57_v21 = vadd.f32 %v55_v19, %v37_v18 }
  0x4a   :  { %vm58_vm0 = vcmp.gt.f32.partialorder %v56_v20, 0.0 }
  0x4b   :  { %v82_v23 = vsel %vm58_vm0, 1.0, %v171_v22  ;;  %vm59_vm1 = vcmp.gt.f32.partialorder %v57_v21, 0.0 }
  0x4c   :  { %64 = vst [vmem:[#allocation7] sm:$0xff] %v82_v23  ;;  %v83_v24 = vsel %vm59_vm1, 1.0, %v171_v22 }
  0x4d   :  { %65 = vst [vmem:[#allocation7 + $0x8] sm:$0xff] %v83_v24 }
  0x4e   :  { %151 = shalt.err (!%p148_p6)
}
  0x4f   :  { %s152_s8 = scalar_lea.hbm %s225_s2, 256 }
  0x50   :  { %p153_p7 = scmp.ne.s32.totalorder %s225_s2, %s152_s8  ;;  %p156_p8 = scmp.lt.u32.totalorder %s152_s8, %s225_s2 }
  0x52   :  { %p158_p9 = pnand %p156_p8, %p153_p7 }
  0x54   :  { %161 = shalt.err (!%p158_p9)
}
  0x55   :  { %75 = dma.vmem_to_hbm [thread:$0]  %s73_s4, 256, %s225_s2, [#allocation4]  }
  0x56   :  { %166 = dma.done.wait [#allocation4], 256  }
  0x57   :  { %167 = vsyncadd [#allocation4], 4294967040 }
  0x58   :  { %79 = vsyncpa [#allocation3], 1 }
  0x59   :  { %80 = vsyncpa [#allocation6], 1 }
  0x5a   :  { %81 = vsyncpa [#allocation4], 1 }

</bundles_post_ra>
